<compile_context>
chip_gen: v5e
topology: v5e:2x2
jax: 0.10.0
libtpu: 0.0.40
codegen_flags: <defaults>
</compile_context>

<pallas_src>
import math

import jax
import jax.numpy as jnp
from jax.experimental import pallas as pl
from jax.experimental.pallas import tpu as pltpu


# Lane-dense slab widths, widest first.
_LANE_WIDTHS = (4096, 2048, 1024, 512, 256, 128)
# DMA chunking: aim for ~_TARGET_CHUNKS transfers in flight, each >= 512 KiB,
# never more than _MAX_CHUNKS (the issue loop is statically unrolled).
_TARGET_CHUNKS = 8
_MAX_CHUNKS = 32
_MIN_CHUNK_BYTES = 512 * 1024
_RING = 4  # DMA-semaphore ring depth


def _resolve_shape(numel, shape):
    """Resolve a torch.view-style shape (supports a single -1)."""
    shape = list(shape)
    neg = [i for i, d in enumerate(shape) if d == -1]
    if len(neg) > 1:
        raise ValueError("only one dimension can be inferred")
    if neg:
        known = math.prod(d for i, d in enumerate(shape) if i != neg[0])
        if known == 0 or numel % known != 0:
            raise ValueError(f"cannot view {numel} elements as {tuple(shape)}")
        shape[neg[0]] = numel // known
    if math.prod(shape) != numel:
        raise ValueError(f"cannot view {numel} elements as {tuple(shape)}")
    return tuple(shape)


def _pick_width(numel):
    """Largest lane width that divides numel exactly (else None)."""
    for w in _LANE_WIDTHS:
        if numel % w == 0:
            return w
    return None


def _divisors(n):
    ds, i = set(), 1
    while i * i <= n:
        if n % i == 0:
            ds.add(i)
            ds.add(n // i)
        i += 1
    return sorted(ds)


def _pick_chunk_rows(rows, width, itemsize):
    """Divisor of `rows` giving ~_TARGET_CHUNKS equal DMA chunks, each big enough."""
    best, best_key = rows, None
    for d in _divisors(rows):
        n = rows // d
        if n > _MAX_CHUNKS:
            continue
        if n > 1 and d * width * itemsize < _MIN_CHUNK_BYTES:
            continue
        key = abs(n - _TARGET_CHUNKS)
        if best_key is None or key < best_key:
            best, best_key = d, key
    return best


def _make_hbm_copy_kernel(n_chunks, chunk_rows, ring):
    """Chunked HBM->HBM DMA copy: zero VMEM, zero vector ops."""

    def kernel(x_hbm, o_hbm, sems):
        def chunk(i, slot):
            lo = i * chunk_rows  # static Python int
            return pltpu.make_async_copy(
                x_hbm.at[pl.ds(lo, chunk_rows)],
                o_hbm.at[pl.ds(lo, chunk_rows)],
                sems.at[slot])

        # Issue loop (statically unrolled, n_chunks <= _MAX_CHUNKS): keep up to
        # `ring` DMAs in flight; retire the oldest on a slot before reusing it.
        for i in range(n_chunks):
            slot = i % ring
            if i >= ring:
                chunk(i - ring, slot).wait()
            chunk(i, slot).start()
        # Drain the tail of the ring.
        for i in range(max(0, n_chunks - ring), n_chunks):
            chunk(i, i % ring).wait()

    return kernel


def _pallas_copy_slab(slab):
    """Identity copy of a 2-D slab via chunked HBM->HBM DMA (no VMEM staging)."""
    rows, width = slab.shape
    itemsize = slab.dtype.itemsize
    chunk_rows = _pick_chunk_rows(rows, width, itemsize)
    n_chunks = rows // chunk_rows
    ring = min(_RING, n_chunks)

    return pl.pallas_call(
        _make_hbm_copy_kernel(n_chunks, chunk_rows, ring),
        out_shape=jax.ShapeDtypeStruct((rows, width), slab.dtype),
        in_specs=[pl.BlockSpec(memory_space=pl.ANY)],
        out_specs=pl.BlockSpec(memory_space=pl.ANY),
        scratch_shapes=[pltpu.SemaphoreType.DMA((ring,))],
        compiler_params=pltpu.CompilerParams(has_side_effects=True),
        cost_estimate=pl.CostEstimate(
            flops=0,
            transcendentals=0,
            bytes_accessed=2 * rows * width * itemsize),
    )(slab)


class Reshape:
    """JAX/Pallas equivalent of torch_geometric.nn.Reshape.

    Default path: pure jnp.reshape (metadata-only, exactly like torch .view).
    pallas_copy=True: opt-in demonstrable Pallas HBM->HBM DMA copy kernel.
    """

    def __init__(self, *shape, pallas_copy=False):
        self.shape = shape
        self.pallas_copy = pallas_copy

    def __call__(self, x):
        target = _resolve_shape(x.size, self.shape)

        if not self.pallas_copy or x.size == 0:
            # Reshape is metadata-only; the ideal "kernel" is no kernel at all.
            return jnp.reshape(x, target)

        width = _pick_width(x.size)
        if width is None:
            # Ragged element count: a lane-dense slab would need a padding pass;
            # the reshape itself is free, so skip the demo copy.
            return jnp.reshape(x, target)

        slab = jnp.reshape(x, (x.size // width, width))  # metadata-only
        out_slab = _pallas_copy_slab(slab)
        return jnp.reshape(out_slab, target)

    def __repr__(self):
        return f"Reshape({', '.join(str(d) for d in self.shape)})"


if __name__ == "__main__":
    key = jax.random.PRNGKey(0)
    x = jax.random.normal(key, (2, 4, 16, 16), dtype=jnp.float32)
    ref = jnp.reshape(x, (2, 4, 256))

    # Default path: metadata-only reshape (matches torch .view semantics).
    y = jax.block_until_ready(Reshape(2, 4, -1)(x))
    assert y.shape == (2, 4, 256) and y.dtype == x.dtype
    assert bool(jnp.array_equal(y, ref))

    # Opt-in Pallas path, tiny tensor -> single-chunk HBM->HBM DMA.
    y1 = jax.block_until_ready(Reshape(2, 4, -1, pallas_copy=True)(x))
    assert y1.shape == (2, 4, 256) and y1.dtype == x.dtype
    assert bool(jnp.array_equal(y1, ref))

    # Opt-in Pallas path, larger tensor -> ring of multiple HBM->HBM DMAs (bf16).
    x2 = jax.random.normal(key, (8, 64, 64, 64), dtype=jnp.bfloat16)
    y2 = jax.block_until_ready(Reshape(8, -1, pallas_copy=True)(x2))
    assert y2.shape == (8, 64 * 64 * 64) and y2.dtype == x2.dtype
    assert bool(jnp.array_equal(y2, jnp.reshape(x2, (8, -1))))

    print("KERNEL_OK")
</pallas_src>

<mosaic_0001>
module attributes {stable_mosaic.version = 11 : i64} {
  func.func @kernel(%arg0: memref<1x2048xf32, #tpu.memory_space<any>>, %arg1: memref<1x2048xf32, #tpu.memory_space<any>>, %arg2: memref<1x!tpu.dma_semaphore, #tpu.memory_space<semaphore_mem>>) attributes {dimension_semantics = [], scalar_prefetch = 0 : i64, scratch_operands = 1 : i64, tpu.core_type = #tpu.core_type<tc>} {
    %c0_i32 = arith.constant 0 : i32
    %c0_i32_0 = arith.constant 0 : i32
    %c0_i32_1 = arith.constant 0 : i32
    %0 = tpu.memref_slice %arg0[%c0_i32_0, %c0_i32_1] : memref<1x2048xf32, #tpu.memory_space<any>> -> memref<1x2048xf32, #tpu.memory_space<any>>
    %c0_i32_2 = arith.constant 0 : i32
    %c0_i32_3 = arith.constant 0 : i32
    %1 = tpu.memref_slice %arg1[%c0_i32_2, %c0_i32_3] : memref<1x2048xf32, #tpu.memory_space<any>> -> memref<1x2048xf32, #tpu.memory_space<any>>
    %2 = tpu.memref_slice %arg2[%c0_i32] : memref<1x!tpu.dma_semaphore, #tpu.memory_space<semaphore_mem>> -> memref<1x!tpu.dma_semaphore, #tpu.memory_space<semaphore_mem>>
    %3 = tpu.memref_squeeze %2 : memref<1x!tpu.dma_semaphore, #tpu.memory_space<semaphore_mem>> -> memref<!tpu.dma_semaphore, #tpu.memory_space<semaphore_mem>>
    tpu.enqueue_dma source(%0 : memref<1x2048xf32, #tpu.memory_space<any>>) target(%1 : memref<1x2048xf32, #tpu.memory_space<any>>) target_semaphore(%3 : memref<!tpu.dma_semaphore, #tpu.memory_space<semaphore_mem>>)
    %c0_i32_4 = arith.constant 0 : i32
    %c0_i32_5 = arith.constant 0 : i32
    %c0_i32_6 = arith.constant 0 : i32
    %4 = tpu.memref_slice %arg0[%c0_i32_5, %c0_i32_6] : memref<1x2048xf32, #tpu.memory_space<any>> -> memref<1x2048xf32, #tpu.memory_space<any>>
    %c0_i32_7 = arith.constant 0 : i32
    %c0_i32_8 = arith.constant 0 : i32
    %5 = tpu.memref_slice %arg1[%c0_i32_7, %c0_i32_8] : memref<1x2048xf32, #tpu.memory_space<any>> -> memref<1x2048xf32, #tpu.memory_space<any>>
    %6 = tpu.memref_slice %arg2[%c0_i32_4] : memref<1x!tpu.dma_semaphore, #tpu.memory_space<semaphore_mem>> -> memref<1x!tpu.dma_semaphore, #tpu.memory_space<semaphore_mem>>
    %7 = tpu.memref_squeeze %6 : memref<1x!tpu.dma_semaphore, #tpu.memory_space<semaphore_mem>> -> memref<!tpu.dma_semaphore, #tpu.memory_space<semaphore_mem>>
    tpu.wait_dma2 semaphore(%7 : memref<!tpu.dma_semaphore, #tpu.memory_space<semaphore_mem>>) src(%4 : memref<1x2048xf32, #tpu.memory_space<any>>) dst(%5 : memref<1x2048xf32, #tpu.memory_space<any>>)
    return
  }
}

</mosaic_0001>

<bundles_post_ra>
// kernel: tpu_custom_call.1
= control target key start
LH: loop header
LB: loop body
LE: loop exit
PB: predicated region body
PF: predicated region fallthrough
CT: control target
= control target key end

     0   :  { %s32_s12 = smov [#allocation2]   ;;  %s33_s13 = smov [#allocation3]   ;;  %s51_s0 = inlined_call_operand.hbm [shape: f32[1,2048], index: 0, kind: input, shape index: {}]   ;;  %s52_s1 = inlined_call_operand.hbm [shape: f32[1,2048], index: 1, kind: output, shape index: {}]  }
   0x1   :  { %s10_s8 = sshll.u32 %s51_s0, 4  ;;  %s12_s11 = sshll.u32 %s52_s1, 4  ;;  %s11_s8 = int_to_ptr.hbm [resolvable:$true] %s10_s8  ;;  %s13_s11 = int_to_ptr.hbm [resolvable:$true] %s12_s11 }
   0x2   :  { %s34_s14 = smov 0  }
   0x3   :  { %16 = dma.general %s11_s8, 256, %s13_s11, %s32_s12, %s33_s13, [#allocation4], %s34_s14, 0  }
   0x4   :  { %30 = dma.done.wait [#allocation2], 256 }
   0x5   :  { %31 = vsyncadd [#allocation2], 4294967040 }
   0x6   :  { %20 = vsyncmov [#allocation2] }
   0x9   :  { %s21_s15 = vpop.sfrf %20 }
   0xa   :  { %p26_p0 = scmp.ne.s32.totalorder %s21_s15, 0 }
   0xc   :  { %25 = shalt.err (%p26_p0)  }

</bundles_post_ra>
